<compile_context>
chip_gen: v6e
topology: v6e:2x2x1
jax: 0.10.0
libtpu: 0.0.40
codegen_flags: <defaults>
</compile_context>

<pallas_src>
import jax
import jax.numpy as jnp
from jax.experimental import pallas as pl
from jax.experimental.pallas import tpu as pltpu


_SMALL_BYPASS_BYTES = 1 << 20  # below ~1 MiB the pallas_call is pure overhead


def _copy_kernel(x_ref, o_ref):
    # Lane-dense tile copy; the actual unflatten is a free metadata reshape
    # done in the wrapper.
    o_ref[...] = x_ref[...]


def _aligned_tile(dim: int, align: int, cap: int) -> int:
    """Largest multiple of `align` <= min(dim, cap); full extent if dim <= align."""
    if dim <= align:
        return dim  # full-extent block always satisfies the (8, 128) rule
    t = min(dim, cap)
    return t - (t % align)


def unflatten(x: jax.Array, w: int, *, force_pallas: bool = False) -> jax.Array:
    """Pallas equivalent of UnFlatten(w).forward(x): (B, D) -> (B, D//w**2, w, w)."""
    B, D = x.shape
    assert D % (w * w) == 0, "feature dim must be divisible by w**2"
    nc = D // (w * w)

    nbytes = x.size * x.dtype.itemsize
    if not force_pallas and nbytes < _SMALL_BYPASS_BYTES:
        # Metadata-only reshape; the kernel would add a full HBM round trip.
        return jnp.reshape(x, (B, nc, w, w))

    # Fixed (8,128)-aligned tiles + cdiv grid (Pallas masks partial edge
    # blocks).  Caps 512x4096 -> <= 8 MiB per f32 tile; in+out double-buffered
    # = ~32 MiB, under the 48 MiB VMEM limit (v7x-safe).
    tb = _aligned_tile(B, 8, 512)
    td = _aligned_tile(D, 128, 4096)

    # Keep >= 2 blocks along a parallel axis so v7x's 2 TensorCores both work.
    if pl.cdiv(B, tb) == 1 and pl.cdiv(D, td) == 1:
        if D >= 256:
            half = td // 2
            td = max(128, half - (half % 128))
        elif B >= 16:
            half = tb // 2
            tb = max(8, half - (half % 8))

    grid = (pl.cdiv(B, tb), pl.cdiv(D, td))

    flat = pl.pallas_call(
        _copy_kernel,
        out_shape=jax.ShapeDtypeStruct((B, D), x.dtype),
        grid_spec=pltpu.PrefetchScalarGridSpec(
            num_scalar_prefetch=0,
            grid=grid,
            in_specs=[pl.BlockSpec((tb, td), lambda i, j: (i, j))],
            out_specs=pl.BlockSpec((tb, td), lambda i, j: (i, j)),
        ),
        # Output holds identical bits, so let it reuse x's HBM buffer.
        input_output_aliases={0: 0},
        compiler_params=pltpu.CompilerParams(
            dimension_semantics=("parallel", "parallel"),
            vmem_limit_bytes=48 * 1024 * 1024,
        ),
    )(x)

    # Row-major reshape == torch .view; pure metadata, no data movement.
    return jnp.reshape(flat, (B, nc, w, w))


if __name__ == "__main__":
    # Case 1: shape implied by the module (B=2, w=4, nc=4 -> D=64).
    # Small input -> takes the reshape bypass (the recommended fast path).
    B, w, nc = 2, 4, 4
    D = nc * w * w
    x = jax.random.normal(jax.random.PRNGKey(0), (B, D), dtype=jnp.float32)
    ref = jnp.reshape(x, (B, nc, w, w))
    out = jax.block_until_ready(unflatten(x, w))
    assert out.shape == (B, nc, w, w), out.shape
    assert out.dtype == x.dtype, out.dtype
    assert jnp.array_equal(out, ref), "mismatch vs. reference reshape (case 1)"

    # Case 2: force the Pallas path on an (8,128)-friendly small shape to make
    # sure the kernel compiles and runs cleanly on TPU (B=16, w=8 -> D=512).
    B2, w2, nc2 = 16, 8, 8
    D2 = nc2 * w2 * w2  # 512
    x2 = jax.random.normal(jax.random.PRNGKey(1), (B2, D2), dtype=jnp.float32)
    ref2 = jnp.reshape(x2, (B2, nc2, w2, w2))
    out2 = jax.block_until_ready(unflatten(x2, w2, force_pallas=True))
    assert out2.shape == (B2, nc2, w2, w2), out2.shape
    assert jnp.array_equal(out2, ref2), "mismatch vs. reference reshape (case 2)"

    # Case 3: unaligned dims exercise the cdiv partial-edge-block path
    # (B=10, w=5, nc=6 -> D=150; blocks (8,128), grid (2,2)).
    B3, w3, nc3 = 10, 5, 6
    D3 = nc3 * w3 * w3  # 150
    x3 = jax.random.normal(jax.random.PRNGKey(2), (B3, D3), dtype=jnp.float32)
    ref3 = jnp.reshape(x3, (B3, nc3, w3, w3))
    out3 = jax.block_until_ready(unflatten(x3, w3, force_pallas=True))
    assert out3.shape == (B3, nc3, w3, w3), out3.shape
    assert jnp.array_equal(out3, ref3), "mismatch vs. reference reshape (case 3)"

    print("KERNEL_OK")
</pallas_src>

<mosaic_0001>
module attributes {stable_mosaic.version = 11 : i64} {
  func.func @_copy_kernel(%arg0: i32, %arg1: i32, %arg2: memref<16x256xf32, #tpu.memory_space<vmem>>, %arg3: memref<16x256xf32, #tpu.memory_space<vmem>>) attributes {dimension_semantics = [#tpu.dimension_semantics<parallel>, #tpu.dimension_semantics<parallel>], iteration_bounds = array<i64: 1, 2>, scalar_prefetch = 0 : i64, scratch_operands = 0 : i64, tpu.core_type = #tpu.core_type<tc>, window_params = [{transform_indices = @transform_0, window_bounds = array<i64: 16, 256>}, {transform_indices = @transform_1, window_bounds = array<i64: 16, 256>}]} {
    %c0 = arith.constant 0 : index
    %c0_0 = arith.constant 0 : index
    %0 = vector.load %arg2[%c0, %c0_0] : memref<16x256xf32, #tpu.memory_space<vmem>>, vector<16x256xf32>
    %c0_1 = arith.constant 0 : index
    %c0_2 = arith.constant 0 : index
    %1 = vector.load %arg3[%c0_1, %c0_2] : memref<16x256xf32, #tpu.memory_space<vmem>>, vector<16x256xf32>
    tpu.vector_store %arg3[%c0_1, %c0_2], %0 {strides = array<i32>} : memref<16x256xf32, #tpu.memory_space<vmem>>, vector<16x256xf32>,
    return
  }
  func.func @transform_0(%arg0: i32, %arg1: i32) -> (i32, i32) {
    %c0_i32 = arith.constant 0 : i32
    return %arg0, %arg1 : i32, i32
  }
  func.func @transform_1(%arg0: i32, %arg1: i32) -> (i32, i32) {
    %c0_i32 = arith.constant 0 : i32
    return %arg0, %arg1 : i32, i32
  }
}

</mosaic_0001>

<bundles_post_ra>
// kernel: tpu_custom_call.1
= control target key start
LH: loop header
LB: loop body
LE: loop exit
PB: predicated region body
PF: predicated region fallthrough
CT: control target
= control target key end

     0   :  { %6 = vsyncpa [#allocation3], 0  ;;  %s627_s0 = inlined_call_operand.hbm [shape: f32[16,512], index: 0, kind: input, shape index: {}, may-alias: {0,1}]   ;;  %s628_s1 = inlined_call_operand.hbm [shape: f32[16,512], index: 1, kind: output, shape index: {}, may-alias: {0,1}]  }
   0x1   :  { %8 = vsyncpa [#allocation3 + $0x1], 0 }
   0x2   :  { %9 = vsyncpa [#allocation4], 0 }
   0x3   :  { %11 = vsyncpa [#allocation4 + $0x1], 0  ;;  %s483_s6 = smov 0   ;;  %s485_s7 = smov 0  }
   0x4   :  { %s487_s8 = smov 0   ;;  %s489_s9 = smov 0  }
   0x5   :  { %s491_s10 = smov 0   ;;  %s493_s11 = smov 0  }
   0x6 LB: > { %s270_s12 = sadd.s32 4294967295, %s463_s11   ;;  %s271_s13 = sadd.s32 4294967294, %s463_s11   ;;  %s463_s11 = sphi %s493_s11, %s17_s11   ;;  %s459_s10 = sphi %s491_s10, %s639_s10   ;;  %s455_s9 = sphi %s489_s9, %s638_s9   ;;  %s451_s8 = sphi %s487_s8, %s637_s8   ;;  %s447_s7 = sphi %s485_s7, %s636_s7   ;;  %s443_s6 = sphi %s483_s6, %s635_s6  }
   0x7   : > { %s26_s14 = sadd.s32 1, %s459_s10  ;;  %s38_s15 = sadd.s32 1, %s451_s8 }
   0x8   : > { %p27_p0 = scmp.ge.s32.totalorder %s26_s14, 2  ;;  %p45_p1 = scmp.ne.s32.totalorder %s451_s8, %s447_s7 }
   0x9   : > { %p46_p2 = scmp.eq.s32.totalorder %s463_s11, 0  ;;  %p51_p3 = scmp.ne.s32.totalorder %s447_s7, %s443_s6 }
   0xa   : > { %s641_s14 = smov (%p27_p0, %s26_s14), 0  ;;  %p52_p5 = scmp.eq.s32.totalorder %s270_s12, 0 }
   0xb   : > { %p524_p4 = por %p46_p2, %p45_p1  ;;  %s34_s17 = ssub.s32 %s459_s10, %s641_s14 }
   0xc   : > { %p77_p6 = scmp.eq.s32.totalorder %s270_s12, 1  ;;  %p36_p7 = scmp.eq.s32.totalorder %s34_s17, 0 }
   0xd   : > { %p530_p8 = por %p52_p5, %p51_p3  ;;  %p83_p10 = scmp.eq.s32.totalorder %s271_s13, 1 }
   0xe   : > { %p534_p9 = por %p77_p6, %p45_p1  ;;  %p299_p13 = scmp.lt.s32.totalorder %s463_s11, 2 }
   0xf   : > { %s539_s20 = scalar_select %p36_p7, %s451_s8, %s38_s15  }
  0x10   : > { %p541_p11 = por %p83_p10, %p51_p3  ;;  %s103_s22 = sand.u32 1, %s451_s8  }
  0x11   : > { %s274_s23 = sshll.u32 %s103_s22, 5  ;;  %s285_s24 = sshll.u32 %s459_s10, 8 }
  0x12   : > { %s116_s27 = scalar_lea.hbm %s627_s0, %s285_s24  ;;  %s107_s28 = scalar_lea.vmem [#allocation2], %s274_s23 }
  0x13   : > { %s117_s29 = sshll.u32 %s107_s28, 4  ;;  %p554_p0 = pnand %p299_p13, %p524_p4  ;;  %s118_s29 = int_to_ptr.vmem [resolvable:$true] %s117_s29 }
  0x14   : > { %s104_s2 = scalar_lea.sflag [#allocation3], %s103_s22  ;;  %s368_s3 = scalar_lea.vmem %s118_s29, 512 }
  0x15   : > { %p357_p1 = pneg %p554_p0  ;;  %p369_p2 = scmp.ne.s32.totalorder %s118_s29, %s368_s3 }
  0x16   : > { %s465_s4 = smov [#allocation2]  }
  0x17   : > { %p371_p3 = pnand %p369_p2, %p357_p1  ;;  %s373_s5 = sshll.u32 %s465_s4, 4  ;;  %s374_s5 = int_to_ptr.vmem [resolvable:$false] %s373_s5 }
  0x18   : > { %s375_s12 = scalar_lea.vmem %s374_s5, 1024  ;;  %p376_p6 = scmp.lt.s32.totalorder %s118_s29, %s374_s5 }
  0x19   : > { %p372_p5 = pneg %p371_p3  ;;  %p377_p7 = scmp.lt.s32.totalorder %s375_s12, %s368_s3 }
  0x1b   : > { %p378_p10 = por %p377_p7, %p376_p6 }
  0x1d   : > { %p379_p12 = pnand %p378_p10, %p372_p5 }
  0x1f   : > { %382 = shalt.err (!%p379_p12)
}
  0x20   : > { %s466_s13 = smov 512   ;;  %s467_s15 = smov 256  }
  0x21   : > { %s468_s16 = smov 16   ;;  %p277_p4 = scmp.ge.s32.totalorder %s463_s11, 1 }
  0x22   : > { %294 = dma.hbm_to_vmem [thread:$0]  (!%p554_p0), %s116_s27, 512, %s118_s29, %s104_s2, %s466_s13, %s467_s15, %s468_s16  }
  0x23   : > { %p125_p13 = scmp.lt.s32.totalorder %s463_s11, 3 }
  0x25   : > { %p126_p1 = pnand %p277_p4, %p125_p13 }
  0x26   : > { %s565_s17 = sand.u32 (!%p126_p1), 1, %s447_s7  }
  0x27   : > { %129 = sbr.rel (%p126_p1) target bundleno = 71 (0x47), region = 24  ;;  %s278_s22 = sshll.u32 (!%p126_p1), %s565_s17, 5 }
  0x28   : > { %s132_s23 = scalar_lea.sflag (!%p126_p1), [#allocation3], %s565_s17  ;;  %s135_s24 = scalar_lea.vmem (!%p126_p1), [#allocation2], %s278_s22 }
  0x2c   : > { %434 = dma.done.wait (%p530_p8), %s132_s23, 512  }
  0x2d   : > { %436 = vsyncadd (%p530_p8), %s132_s23, 4294966784  ;;  %s153_s25 = scalar_lea.vmem [#allocation5], %s278_s22  ;;  %s286_s27 = sshll.u32 %s455_s9, 8  ;;  %v158_v0 = vld [vmem:[%s135_s24] sm:$0xff]  ;;  %v159_v1 = vld [vmem:[%s135_s24 + $0x8] sm:$0xff] }
  0x2e   : > { %s183_s26 = sshll.u32 %s153_s25, 4  ;;  %s579_s30 = scalar_lea.hbm %s628_s1, %s286_s27  ;;  %v160_v2 = vld [vmem:[%s135_s24 + $0x10] sm:$0xff]  ;;  %162 = vst [vmem:[%s153_s25] sm:$0xff] %v158_v0  ;;  %163 = vst [vmem:[%s153_s25 + $0x8] sm:$0xff] %v159_v1  ;;  %v161_v3 = vld [vmem:[%s135_s24 + $0x18] sm:$0xff]  ;;  %s574_s26 = int_to_ptr.vmem [resolvable:$true] %s183_s26 }
  0x2f   : > { %164 = vst [vmem:[%s153_s25 + $0x10] sm:$0xff] %v160_v2  ;;  %165 = vst [vmem:[%s153_s25 + $0x18] sm:$0xff] %v161_v3  ;;  %s167_s18 = scalar_lea.sflag [#allocation4], %s565_s17  ;;  %s383_s9 = scalar_lea.vmem %s574_s26, 512 }
  0x30   : > { %p384_p8 = scmp.ne.s32.totalorder %s574_s26, %s383_s9  ;;  %s469_s2 = smov [#allocation5]  }
  0x31   : > { %s387_s3 = sshll.u32 %s469_s2, 4  ;;  %s388_s3 = int_to_ptr.vmem [resolvable:$false] %s387_s3 }
  0x32   : > { %p385_p12 = pnand %p384_p8, %p534_p9  ;;  %s389_s4 = scalar_lea.vmem %s388_s3, 1024 }
  0x33   : > { %p390_p2 = scmp.lt.s32.totalorder %s574_s26, %s388_s3  ;;  %p391_p3 = scmp.lt.s32.totalorder %s389_s4, %s383_s9 }
  0x34   : > { %p386_p0 = pneg %p385_p12 }
  0x35   : > { %p392_p5 = por %p391_p3, %p390_p2 }
  0x37   : > { %p393_p6 = pnand %p392_p5, %p386_p0 }
  0x39   : > { %396 = shalt.err (!%p393_p6)
}
  0x3a   : > { %s397_s5 = scalar_lea.hbm %s579_s30, 512  ;;  %s401_s15 = scalar_lea.hbm %s628_s1, 1024 }
  0x3b   : > { %p398_p7 = scmp.ne.s32.totalorder %s579_s30, %s397_s5  ;;  %p402_p13 = scmp.lt.s32.totalorder %s579_s30, %s628_s1 }
  0x3c   : > { %p403_p1 = scmp.lt.s32.totalorder %s401_s15, %s397_s5 }
  0x3d   : > { %p399_p10 = pnand %p398_p7, %p534_p9 }
  0x3e   : > { %p404_p8 = por %p403_p1, %p402_p13 }
  0x3f   : > { %p400_p4 = pneg %p399_p10 }
  0x41   : > { %p405_p12 = pnand %p404_p8, %p400_p4 }
  0x43   : > { %408 = shalt.err (!%p405_p12)
}
  0x44   : > { %s470_s23 = smov 256   ;;  %s471_s24 = smov 512  }
  0x45   : > { %s472_s25 = smov 16  }
  0x46   : > { %289 = dma.vmem_to_hbm [thread:$0]  (%p534_p9), %s574_s26, 512, %s579_s30, %s167_s18, %s470_s23, %s471_s24, %s472_s25  }
  0x47 PF: > { %s198_s27 = sand.u32 1, %s443_s6   ;;  %p634_p0 = scmp.ge.s32.totalorder %s463_s11, 2 }
  0x48   : > { %s199_s28 = scalar_lea.sflag [#allocation4], %s198_s27 }
  0x49   : > { %p296_p2 = pnand %p634_p0, %p541_p11 }
  0x4b   : > { %p297_p3 = pneg %p296_p2 }
  0x4d   : > { %438 = dma.done.wait (%p297_p3), %s199_s28, 512  }
  0x4e   : > { %440 = vsyncadd (%p297_p3), %s199_s28, 4294966784  ;;  %s17_s11 = sadd.s32 1, %s463_s11   ;;  %s635_s6 = smov %s447_s7 }
  0x4f   : > { %p14_p5 = scmp.ge.s32.totalorder %s17_s11, 4   ;;  %s636_s7 = smov %s451_s8 }
  0x50   : > { %s637_s8 = smov %s539_s20  ;;  %s638_s9 = smov %s459_s10 }
  0x51   : > { %s639_s10 = smov %s641_s14  ;;  %16 = sbr.rel (!%p14_p5) target bundleno = 6 (0x6), region = 69 }
  0x56   :  { %204 = vsyncpa [#allocation3], 1 }
  0x57   :  { %206 = vsyncpa [#allocation3 + $0x1], 1 }
  0x58   :  { %207 = vsyncpa [#allocation4], 1 }
  0x59   :  { %209 = vsyncpa [#allocation4 + $0x1], 1 }

</bundles_post_ra>
